<compile_context>
chip_gen: v6e
topology: v6e:2x2x1
jax: 0.10.0
libtpu: 0.0.40
codegen_flags: <defaults>
</compile_context>

<pallas_src>
import functools

import jax
import jax.numpy as jnp
import numpy as np
from jax.experimental import pallas as pl
from jax.experimental.pallas import tpu as pltpu


def _round_up(n, m):
    return ((n + m - 1) // m) * m


def _choose_blocks(b, t, d, q):
    """Pick (Bb = batch rows per grid step, cb = batch rows per inner chunk)."""
    # Per-batch-row VMEM footprint of the f32 tiles.  The last two dims of each
    # tile pad to (8, 128): the (T, D), (1, 1) and (Q, D) planes all round up.
    # BlockSpec double-buffers every operand (factor 2).
    x_row = _round_up(t, 8) * _round_up(d, 128) * 4
    vl_row = 8 * 128 * 4
    out_row = _round_up(q, 8) * _round_up(d, 128) * 4
    per_row = 2 * (x_row + vl_row + out_row)
    budget = 20 * 1024 * 1024          # of the 32 MiB scoped-VMEM limit below
    bb = max(1, budget // per_row)     # as big as the VMEM budget allows
    bb = min(bb, b)
    if b >= 2:
        # >= 2 grid steps so ("parallel",) can shard across v7x's two TCs.
        bb = min(bb, (b + 1) // 2)
    # Inner chunk: ~256 flattened (batch*T) rows per matmul keeps hid/attn/e/p
    # in vregs (no spills) while the per-step DMA tile stays large.
    cb = max(1, min(bb, 256 // max(t, 1)))
    bb = max(cb, (bb // cb) * cb)      # grid block must be a multiple of cb
    return bb, cb


def _sap_kernel(x_ref, vl_ref, w1_ref, w2_ref, out_ref, *, bb, cb, t, d, h, q):
    """One grid step = one block of `bb` batch rows, processed in chunks of `cb`.

    x_ref  : VMEM (Bb, T, D) f32
    vl_ref : VMEM (Bb, 1, 1) int32   (valid lengths)
    w1_ref : VMEM (D, H)  f32        (resident across the grid)
    w2_ref : VMEM (H, Q)  f32        (resident across the grid)
    out_ref: VMEM (Bb, Q, D) f32
    """
    del h
    w1 = w1_ref[...]
    w2 = w2_ref[...]
    # Timestep index, built once per grid step; the compare below broadcasts it
    # over the batch (via vl) and over the query axis.
    t_idx = jax.lax.broadcasted_iota(jnp.int32, (1, t, 1), 1)

    def compute(x, vl):
        rows = x.shape[0]
        # Projections on the flattened (rows*T, D) slab (better MXU occupancy).
        xf = x.reshape(rows * t, d)
        hid = jnp.tanh(jnp.dot(xf, w1, preferred_element_type=jnp.float32))
        attn = jnp.dot(hid, w2, preferred_element_type=jnp.float32)
        attn = attn.reshape(rows, t, q)
        # Mask padded timesteps: (t+1) > valid_len  <=>  t_idx >= valid_len.
        attn = jnp.where(t_idx >= vl, jnp.float32(-1000000.0), attn)
        # Softmax over T (axis 1), max-subtracted; exact denominator.
        attn = attn - jnp.max(attn, axis=1, keepdims=True)
        e = jnp.exp(attn)
        p = e / jnp.sum(e, axis=1, keepdims=True)
        # out[b] = attn[b]^T @ x[b]: batched contraction over T (no transpose).
        out = jax.lax.dot_general(
            p, x, dimension_numbers=(((1,), (1,)), ((0,), (0,))),
            preferred_element_type=jnp.float32)             # (rows, Q, D)
        return out.astype(out_ref.dtype)

    n_chunks = bb // cb
    if n_chunks == 1:
        out_ref[...] = compute(x_ref[...], vl_ref[...])
    else:
        def chunk(c, carry):
            start = pl.multiple_of(c * cb, cb)
            x = x_ref[pl.ds(start, cb), :, :]
            vl = vl_ref[pl.ds(start, cb), :, :]
            out_ref[pl.ds(start, cb), :, :] = compute(x, vl)
            return carry

        jax.lax.fori_loop(0, n_chunks, chunk, 0)


@jax.jit
def sap_block(x, valid_lens, w1, w2):
    """x: (B,T,D) f32, valid_lens: (B,) int, w1: (D,H), w2: (H,Q) -> (B,Q,D)."""
    B, T, D = x.shape
    H = w1.shape[1]
    Q = w2.shape[1]
    bb, cb = _choose_blocks(B, T, D, Q)
    n_steps = pl.cdiv(B, bb)
    b_pad = n_steps * bb

    if b_pad != B:
        # Pad awkward batch sizes instead of shrinking the block; padded rows
        # (zero features, valid_len 0) are sliced off below.
        x = jnp.pad(x, ((0, b_pad - B), (0, 0), (0, 0)))
        valid_lens = jnp.pad(valid_lens, (0, b_pad - B))

    vl3 = valid_lens.astype(jnp.int32).reshape(b_pad, 1, 1)

    kernel = functools.partial(_sap_kernel, bb=bb, cb=cb, t=T, d=D, h=H, q=Q)

    cost = pl.CostEstimate(
        flops=2 * b_pad * T * (D * H + H * Q + Q * D),
        transcendentals=b_pad * T * (H + Q),
        bytes_accessed=4 * (b_pad * T * D + D * H + H * Q + b_pad * Q * D + b_pad),
    )

    out = pl.pallas_call(
        kernel,
        out_shape=jax.ShapeDtypeStruct((b_pad, Q, D), jnp.float32),
        grid_spec=pltpu.PrefetchScalarGridSpec(
            num_scalar_prefetch=0,
            grid=(n_steps,),
            in_specs=[
                pl.BlockSpec((bb, T, D), lambda b: (b, 0, 0)),   # x
                pl.BlockSpec((bb, 1, 1), lambda b: (b, 0, 0)),   # valid lens
                pl.BlockSpec((D, H), lambda b: (0, 0)),          # w1 (resident)
                pl.BlockSpec((H, Q), lambda b: (0, 0)),          # w2 (resident)
            ],
            out_specs=pl.BlockSpec((bb, Q, D), lambda b: (b, 0, 0)),
        ),
        compiler_params=pltpu.CompilerParams(
            dimension_semantics=("parallel",),
            vmem_limit_bytes=32 * 1024 * 1024),
        cost_estimate=cost,
    )(x, vl3, w1, w2)

    return out[:B] if b_pad != B else out


def sap_block_ref(x, valid_lens, w1, w2):
    """Pure-JAX reference mirroring the PyTorch forward."""
    attn = jnp.einsum("btd,dh->bth", x, w1)
    attn = jnp.einsum("bth,hq->btq", jnp.tanh(attn), w2)          # (B, T, Q)
    B, T, Q = attn.shape
    t_plus_1 = jnp.arange(1, T + 1, dtype=jnp.float32)[None, :, None]
    mask = t_plus_1 > valid_lens.astype(jnp.float32)[:, None, None]
    attn = jnp.where(mask, -1000000.0, attn)
    attn = jax.nn.softmax(attn, axis=-2)
    out = jnp.einsum("bdt,btq->bdq", jnp.transpose(x, (0, 2, 1)), attn)
    return jnp.transpose(out, (0, 2, 1))                          # (B, Q, D)


def _make_inputs(key, b, t, d, h, q):
    kx, kl, k1, k2 = jax.random.split(key, 4)
    x = jax.random.normal(kx, (b, t, d), dtype=jnp.float32)
    valid_lens = jax.random.randint(kl, (b,), 1, t + 1, dtype=jnp.int32)
    w1 = (jax.random.uniform(k1, (d, h), dtype=jnp.float32) - 0.5) * (2.0 / np.sqrt(d))
    w2 = (jax.random.uniform(k2, (h, q), dtype=jnp.float32) - 0.5) * (2.0 / np.sqrt(h))
    return x, valid_lens, w1, w2


if __name__ == "__main__":
    # Small shapes consistent with the module: B=2, T=8 (seq), D=32 (feature),
    # hidden_size=16, query_num=4.
    B, T, D, H, Q = 2, 8, 32, 16, 4

    x, _, w1, w2 = _make_inputs(jax.random.PRNGKey(0), B, T, D, H, Q)
    valid_lens = jnp.array([5, 8], dtype=jnp.int32)

    out = jax.block_until_ready(sap_block(x, valid_lens, w1, w2))
    ref = sap_block_ref(x, valid_lens, w1, w2)
    # Exact softmax denominator now; remaining tolerance covers MXU f32
    # multi-pass matmul precision vs. the XLA einsum reference.
    np.testing.assert_allclose(np.asarray(out), np.asarray(ref),
                               rtol=3e-3, atol=3e-3)

    # Extra checks: awkward batch size (exercises the padding path) and a
    # batch large enough to exercise the multi-chunk fori_loop per grid step.
    for b_extra in (67, 128):
        xb, vlb, w1b, w2b = _make_inputs(jax.random.PRNGKey(b_extra),
                                         b_extra, T, D, H, Q)
        ob = jax.block_until_ready(sap_block(xb, vlb, w1b, w2b))
        rb = sap_block_ref(xb, vlb, w1b, w2b)
        np.testing.assert_allclose(np.asarray(ob), np.asarray(rb),
                                   rtol=3e-3, atol=3e-3)

    print("KERNEL_OK")
</pallas_src>

<mosaic_0001>
module attributes {stable_mosaic.version = 11 : i64} {
  func.func @_sap_kernel(%arg0: i32, %arg1: memref<1x8x32xf32, #tpu.memory_space<vmem>>, %arg2: memref<1x1x1xi32, #tpu.memory_space<vmem>>, %arg3: memref<32x16xf32, #tpu.memory_space<vmem>>, %arg4: memref<16x4xf32, #tpu.memory_space<vmem>>, %arg5: memref<1x4x32xf32, #tpu.memory_space<vmem>>) attributes {dimension_semantics = [#tpu.dimension_semantics<parallel>], iteration_bounds = array<i64: 2>, scalar_prefetch = 0 : i64, scratch_operands = 0 : i64, tpu.core_type = #tpu.core_type<tc>, window_params = [{transform_indices = @transform_0, window_bounds = array<i64: 1, 8, 32>}, {transform_indices = @transform_1, window_bounds = array<i64: 1, 1, 1>}, {pipeline_mode = #tpu.pipeline_mode<synchronous>, transform_indices = @transform_2, window_bounds = array<i64: 32, 16>}, {pipeline_mode = #tpu.pipeline_mode<synchronous>, transform_indices = @transform_3, window_bounds = array<i64: 16, 4>}, {transform_indices = @transform_4, window_bounds = array<i64: 1, 4, 32>}]} {
    %c0 = arith.constant 0 : index
    %c0_0 = arith.constant 0 : index
    %0 = vector.load %arg3[%c0, %c0_0] : memref<32x16xf32, #tpu.memory_space<vmem>>, vector<32x16xf32>
    %c0_1 = arith.constant 0 : index
    %c0_2 = arith.constant 0 : index
    %1 = vector.load %arg4[%c0_1, %c0_2] : memref<16x4xf32, #tpu.memory_space<vmem>>, vector<16x4xf32>
    %2 = tpu.iota {dimensions = array<i32: 1>} : vector<1x8x1xi32>
    %c0_3 = arith.constant 0 : index
    %c0_4 = arith.constant 0 : index
    %c0_5 = arith.constant 0 : index
    %3 = vector.load %arg1[%c0_3, %c0_4, %c0_5] : memref<1x8x32xf32, #tpu.memory_space<vmem>>, vector<1x8x32xf32>
    %c0_6 = arith.constant 0 : index
    %c0_7 = arith.constant 0 : index
    %c0_8 = arith.constant 0 : index
    %4 = vector.load %arg2[%c0_6, %c0_7, %c0_8] : memref<1x1x1xi32, #tpu.memory_space<vmem>>, vector<1x1x1xi32>
    %5 = vector.shape_cast %3 : vector<1x8x32xf32> to vector<8x32xf32>
    %cst = arith.constant dense<0.000000e+00> : vector<8x16xf32>
    %6 = tpu.matmul %5, %0, %cst {dimension_numbers = #tpu.dot_dimension_numbers<[1], [0], [0], [1], [0, 0, 1, 1], [], []>} : vector<8x32xf32>, vector<32x16xf32>, vector<8x16xf32> -> vector<8x16xf32>
    %7 = math.tanh %6 : vector<8x16xf32>
    %cst_9 = arith.constant dense<0.000000e+00> : vector<8x4xf32>
    %8 = tpu.matmul %7, %1, %cst_9 {dimension_numbers = #tpu.dot_dimension_numbers<[1], [0], [0], [1], [0, 0, 1, 1], [], []>} : vector<8x16xf32>, vector<16x4xf32>, vector<8x4xf32> -> vector<8x4xf32>
    %9 = vector.shape_cast %8 : vector<8x4xf32> to vector<1x8x4xf32>
    %10 = vector.broadcast %4 : vector<1x1x1xi32> to vector<1x8x1xi32>
    %11 = arith.cmpi sge, %2, %10 : vector<1x8x1xi32>
    %cst_10 = arith.constant -1.000000e+06 : f32
    %12 = vector.shape_cast %11 : vector<1x8x1xi1> to vector<1x8x1xi1>
    %13 = vector.broadcast %12 : vector<1x8x1xi1> to vector<1x8x4xi1>
    %14 = vector.broadcast %cst_10 : f32 to vector<1x8x4xf32>
    %15 = arith.select %13, %14, %9 : vector<1x8x4xi1>, vector<1x8x4xf32>
    %cst_11 = arith.constant dense<0xFF800000> : vector<1x4xf32>
    %16 = vector.multi_reduction <maximumf>, %15, %cst_11 [1] : vector<1x8x4xf32> to vector<1x4xf32>
    %17 = vector.shape_cast %16 : vector<1x4xf32> to vector<1x1x4xf32>
    %18 = vector.broadcast %17 : vector<1x1x4xf32> to vector<1x8x4xf32>
    %19 = arith.subf %15, %18 : vector<1x8x4xf32>
    %20 = math.exp %19 : vector<1x8x4xf32>
    %cst_12 = arith.constant dense<0.000000e+00> : vector<1x4xf32>
    %21 = vector.multi_reduction <add>, %20, %cst_12 [1] : vector<1x8x4xf32> to vector<1x4xf32>
    %22 = vector.shape_cast %21 : vector<1x4xf32> to vector<1x1x4xf32>
    %23 = vector.broadcast %22 : vector<1x1x4xf32> to vector<1x8x4xf32>
    %24 = arith.divf %20, %23 : vector<1x8x4xf32>
    %cst_13 = arith.constant dense<0.000000e+00> : vector<1x4x32xf32>
    %25 = tpu.matmul %24, %3, %cst_13 {dimension_numbers = #tpu.dot_dimension_numbers<[1], [1], [2], [2], [0, 0, 0, 2, 1, 2], [0], [0]>} : vector<1x8x4xf32>, vector<1x8x32xf32>, vector<1x4x32xf32> -> vector<1x4x32xf32>
    %c0_14 = arith.constant 0 : index
    %c0_15 = arith.constant 0 : index
    %c0_16 = arith.constant 0 : index
    %26 = vector.load %arg5[%c0_14, %c0_15, %c0_16] : memref<1x4x32xf32, #tpu.memory_space<vmem>>, vector<1x4x32xf32>
    tpu.vector_store %arg5[%c0_14, %c0_15, %c0_16], %25 {strides = array<i32>} : memref<1x4x32xf32, #tpu.memory_space<vmem>>, vector<1x4x32xf32>,
    return
  }
  func.func @transform_0(%arg0: i32) -> (i32, i32, i32) {
    %c0_i32 = arith.constant 0 : i32
    %c0_i32_0 = arith.constant 0 : i32
    %c0_i32_1 = arith.constant 0 : i32
    return %arg0, %c0_i32, %c0_i32_0 : i32, i32, i32
  }
  func.func @transform_1(%arg0: i32) -> (i32, i32, i32) {
    %c0_i32 = arith.constant 0 : i32
    %c0_i32_0 = arith.constant 0 : i32
    %c0_i32_1 = arith.constant 0 : i32
    return %arg0, %c0_i32, %c0_i32_0 : i32, i32, i32
  }
  func.func @transform_2(%arg0: i32) -> (i32, i32) {
    %c0_i32 = arith.constant 0 : i32
    %c0_i32_0 = arith.constant 0 : i32
    %c0_i32_1 = arith.constant 0 : i32
    return %c0_i32, %c0_i32_0 : i32, i32
  }
  func.func @transform_3(%arg0: i32) -> (i32, i32) {
    %c0_i32 = arith.constant 0 : i32
    %c0_i32_0 = arith.constant 0 : i32
    %c0_i32_1 = arith.constant 0 : i32
    return %c0_i32, %c0_i32_0 : i32, i32
  }
  func.func @transform_4(%arg0: i32) -> (i32, i32, i32) {
    %c0_i32 = arith.constant 0 : i32
    %c0_i32_0 = arith.constant 0 : i32
    %c0_i32_1 = arith.constant 0 : i32
    return %arg0, %c0_i32, %c0_i32_0 : i32, i32, i32
  }
}

</mosaic_0001>

<bundles_post_ra>
// kernel: sap_block.1
= control target key start
LH: loop header
LB: loop body
LE: loop exit
PB: predicated region body
PF: predicated region fallthrough
CT: control target
= control target key end

     0   :  { %9 = vsyncpa [#allocation3], 0  ;;  %s897_s0 = inlined_call_operand.vmem [shape: f32[2,8,32], index: 0, kind: input, shape index: {}]   ;;  %s898_s1 = inlined_call_operand.vmem [shape: s32[2,1,1], index: 1, kind: input, shape index: {}]   ;;  %s899_s2 = inlined_call_operand.vmem [shape: f32[32,16], index: 2, kind: input, shape index: {}]   ;;  %s900_s3 = inlined_call_operand.vmem [shape: f32[16,4], index: 3, kind: input, shape index: {}]   ;;  %s901_s4 = inlined_call_operand.hbm [shape: f32[2,4,32], index: 4, kind: output, shape index: {}]  }
   0x1   :  { %11 = vsyncpa [#allocation3 + $0x1], 0  ;;  %s774_s15 = smov 0   ;;  %s776_s16 = smov 0  }
   0x2   :  { %s778_s17 = smov 0   ;;  %s780_s18 = smov 0  }
   0x3 LB: > { %s795_s19 = sadd.s32 4294967295, %s743_s18   ;;  %s587_s20 = sadd.s32 4294967294, %s743_s18   ;;  %s743_s18 = sphi %s780_s18, %s907_s18   ;;  %s739_s17 = sphi %s778_s17, %s906_s17   ;;  %s735_s16 = sphi %s776_s16, %s905_s16   ;;  %s731_s15 = sphi %s774_s15, %s904_s15  }
   0x4   : > { %s799_s21 = sadd.s32 1, %s743_s18   ;;  %s118_s22 = sadd.s32 1, %s739_s17 }
   0x5   : > { %s115_s23 = ssub.s32 %s743_s18, %s799_s21  ;;  %p128_p0 = scmp.ne.s32.totalorder %s739_s17, %s735_s16 }
   0x6   : > { %p116_p1 = scmp.eq.s32.totalorder %s115_s23, 0  ;;  %p129_p2 = scmp.eq.s32.totalorder %s795_s19, 1 }
   0x7   : > { %p134_p3 = scmp.ne.s32.totalorder %s735_s16, %s731_s15  ;;  %p135_p4 = scmp.eq.s32.totalorder %s587_s20, 1 }
   0x8   : > { %s810_s24 = scalar_select %p116_p1, %s739_s17, %s118_s22  }
   0x9   : > { %p812_p5 = por %p129_p2, %p128_p0  ;;  %p816_p6 = por %p135_p4, %p134_p3 }
   0xa   : > { %p590_p7 = scmp.ge.s32.totalorder %s743_s18, 1  ;;  %p172_p8 = scmp.lt.s32.totalorder %s743_s18, 3 }
   0xc   : > { %p173_p9 = pnand %p590_p7, %p172_p8 }
   0xd   : > { %p200_p10 = scmp.lt.s32.totalorder (!%p173_p9), %s795_s19, 1  ;;  %s197_s30 = sand.u32 (!%p173_p9), 1, %s735_s16  }
   0xe   : > { %176 = sbr.rel (%p173_p9) target bundleno = 821 (0x335), region = 36  ;;  %s598_s6 = sshll.u32 (!%p173_p9), %s795_s19, 6 }
   0xf   : > { %s856_s11 = scalar_lea.hbm (!%p173_p9), %s901_s4, %s598_s6  ;;  %s506_s12 = scalar_lea.sflag (!%p173_p9), [#allocation3], %s197_s30 }
  0x13   : > { %v210_v0 = vld [vmem:[%s899_s2 + $0x18] sm:$0xff]  ;;  %v745_v1 = vmov 0.0   ;;  %v209_v2 = vld [vmem:[%s899_s2 + $0x10] sm:$0xff]  ;;  %vm746_vm0 = vmmov 0   ;;  %s201_s5 = scalar_select %p200_p10, %s795_s19, 1  ;;  %v208_v3 = vld [vmem:[%s899_s2 + $0x8] sm:$0xff]  ;;  %v213_v8 = vlaneseq }
  0x14   : > { %611 = vmatprep.subr.mxu0 %v745_v1  ;;  %619 = vmatprep.mubr.msk.f32.mxu0 %vm746_vm0, %v745_v1  ;;  %v207_v4 = vld [vmem:[%s899_s2] sm:$0xff]  ;;  %vm217_vm1 = vcmask 261120   ;;  %v212_v6 = vld [vmem:[%s900_s3 + $0x8] sm:$0xff]  ;;  %v747_v9 = vmov 0   ;;  %vm292_vm3 = vcmask 130048   ;;  %vm377_vm5 = vcmask 31744  }
  0x15   : > { %612 = vmatpush3.msra.mxu0 %v210_v0  ;;  %622 = vmatprep.subr.mxu1 %v745_v1  ;;  %s592_s8 = sshll.u32 %s201_s5, 3  ;;  %v211_v7 = vld [vmem:[%s900_s3] sm:$0xff]  ;;  %s206_s29 = scalar_lea.vmem %s898_s1, %s201_s5  ;;  %v214_v11 = vshrl.u32 %v213_v8, 7  ;;  %vm429_vm6 = vcmask 64512   ;;  %vm503_vm7 = vcmask 257024  }
  0x16   : > { %613 = vmatprep.subr.mxu0 %v745_v1  ;;  %626 = vmatprep.mubr.msk.f32.mxu1 %vm746_vm0, %v745_v1  ;;  %s203_s13 = scalar_lea.vmem %s897_s0, %s592_s8  ;;  %v595_v10 = vld [vmem:[%s206_s29] ss:$0 sm:$0xff]  ;;  %s591_s5 = sshll.u32 %s197_s30, 2 }
  0x17   : > { %614 = vmatpush3.msra.mxu0 %v209_v2  ;;  %v215_v5 = vld [vmem:[%s203_s13] sm:$0xff]  ;;  %623 = vmatpush3.msra.mxu1 %v212_v6  ;;  %vm370_vm2 = vcmp.ge.s32.totalorder %v214_v11, %v595_v10  ;;  %s199_s7 = scalar_lea.vmem [#allocation2], %s591_s5  ;;  %s748_s19 = smov [#allocation2]  }
  0x18   : > { %615 = vmatprep.subr.mxu0 %v745_v1  ;;  %624 = vmatprep.subr.mxu1 %v745_v1  ;;  %v371_v12 = vsel %vm370_vm2, 1, %v747_v9  ;;  %s519_s8 = sshll.u32 %s199_s7, 4  ;;  %s687_s14 = sshll.u32 %s748_s19, 4  ;;  %s858_s8 = int_to_ptr.vmem [resolvable:$true] %s519_s8  ;;  %s688_s14 = int_to_ptr.vmem [resolvable:$false] %s687_s14 }
  0x19   : > { %616 = vmatpush3.msra.mxu0 %v208_v3  ;;  %625 = vmatpush3.msra.mxu1 %v211_v7  ;;  %s683_s13 = scalar_lea.vmem %s858_s8, 64  ;;  %s689_s20 = scalar_lea.vmem %s688_s14, 128 }
  0x1a   : > { %617 = vmatprep.subr.mxu0 %v745_v1  ;;  %629 = vmatprep.subr.mxu1 %v745_v1  ;;  %p684_p11 = scmp.ne.s32.totalorder %s858_s8, %s683_s13  ;;  %p690_p0 = scmp.lt.s32.totalorder %s858_s8, %s688_s14 }
  0x1b   : > { %618 = vmatpush3.msra.mxu0 %v207_v4  ;;  %676 = vset.pattern.permute.xlu0 %v747_v9  ;;  %p691_p1 = scmp.lt.s32.totalorder %s689_s20, %s683_s13 }
  0x1c   : > { %620 = vmatmul.mubr.msk.f32.vlgmr.msra.gmra.mxu0 %vm217_vm1, %v215_v5  ;;  %373 = vperm.xlu0 %676, %v371_v12   ;;  %p685_p12 = pnand %p684_p11, %p812_p5 }
  0x1d   : > { %p692_p2 = por %p691_p1, %p690_p0 }
  0x1e   : > { %p686_p13 = pneg %p685_p12 }
  0x20   : > { %p693_p3 = pnand %p692_p2, %p686_p13 }
  0x97   : > { %v374_v16 = vpop.permute.xlu0 %373 }
  0x98   : > { %vm375_vm4 = vcmp.eq.s32.totalorder %v374_v16, 1 }
  0xdc   : > { %v287_v13 = vpop.f32.mrf.mxu0 }
  0xdd   : > { %677 = vtanh.f32 %v287_v13 }
  0xde   : > { %v621_v14 = vpop.f32.mrf.mxu0 }
  0xea   : > { %v678_v15 = vpop.eup %677 }
  0xeb   : > { %627 = vmatmul.mubr.msk.f32.vlgmr.msra.gmra.mxu1 %vm292_vm3, %v678_v15 }
  0xec   : > { %630 = vmatpush3.msra.mxu1 %v215_v5  ;;  %631 = vmatprep.mubr.msk.f32.mxu1 %vm746_vm0, %v745_v1 }
 0x1ab   : > { %v362_v17 = vpop.f32.mrf.mxu1 }
 0x1ac   : > { %v376_v18 = vsel %vm375_vm4, -1000000.0, %v362_v17 }
 0x1ad   : > { %v378_v19 = vsel %vm377_vm5, %v376_v18, -inf  ;;  %v628_v20 = vpop.f32.mrf.mxu1 }
 0x1ae   : > { %v379_v21 = vrot.slane %v378_v19, 4 }
 0x1b0   : > { %v380_v22 = vmax.f32 %v378_v19, %v379_v21 }
 0x1b2   : > { %v381_v23 = vrot.slane %v380_v22, 2 }
 0x1b4   : > { %v382_v24 = vmax.f32 %v380_v22, %v381_v23 }
 0x1b6   : > { %v383_v25 = vrot.slane %v382_v24, 1 }
 0x1b8   : > { %v384_v26 = vmax.f32 %v382_v24, %v383_v25 }
 0x1ba   : > { %v385_v27 = vsub.f32 %v376_v18, %v384_v26 }
 0x1bc   : > { %v386_v28 = vmul.f32 1.442695, %v385_v27 }
 0x1be   : > { %679 = vpow2.f32 %v386_v28 }
 0x1cb   : > { %v680_v29 = vpop.eup %679 }
 0x1cc   : > { %v388_v30 = vsel %vm377_vm5, %v680_v29, 0.0 }
 0x1cd   : > { %v389_v31 = vrot.slane %v388_v30, 4 }
 0x1cf   : > { %v390_v32 = vadd.f32 %v389_v31, %v388_v30 }
 0x1d1   : > { %v391_v33 = vrot.slane %v390_v32, 2 }
 0x1d3   : > { %v392_v34 = vadd.f32 %v391_v33, %v390_v32 }
 0x1d5   : > { %v393_v35 = vrot.slane %v392_v34, 1 }
 0x1d7   : > { %v394_v36 = vadd.f32 %v393_v35, %v392_v34 }
 0x1d9   : > { %681 = vrcp.f32 %v394_v36 }
 0x1e6   : > { %v682_v37 = vpop.eup %681 }
 0x1e7   : > { %v396_v38 = vmul.f32 %v682_v37, %v680_v29 }
 0x1e9   : > { %397 = vxpose.xlu0.b32.start.end [1/1] (short) (narrow) %v396_v38, 8 }
 0x265   : > { %v413_v39 = vpop.trf.xlu0 }
 0x266   : > { %632 = vmatmul.mubr.msk.f32.vlgmr.msra.gmra.mxu1 %vm429_vm6, %v413_v39 }
 0x326   : > { %v499_v40 = vpop.f32.mrf.mxu1 }
 0x327   : > { %504 = vst.msk [vmem:[%s199_s7] sm:$0xf] %vm503_vm7, %v499_v40 }
 0x328   : > { %v633_v41 = vpop.f32.mrf.mxu1 }
 0x329   : > { %696 = shalt.err (!%p693_p3)
}
 0x32a   : > { %s697_s22 = scalar_lea.hbm %s856_s11, 64  ;;  %s701_s28 = scalar_lea.hbm %s901_s4, 128 }
 0x32b   : > { %p698_p4 = scmp.ne.s32.totalorder %s856_s11, %s697_s22  ;;  %p702_p9 = scmp.lt.s32.totalorder %s856_s11, %s901_s4 }
 0x32c   : > { %p703_p10 = scmp.lt.s32.totalorder %s701_s28, %s697_s22 }
 0x32d   : > { %p699_p7 = pnand %p698_p4, %p812_p5 }
 0x32e   : > { %p704_p11 = por %p703_p10, %p702_p9 }
 0x32f   : > { %p700_p8 = pneg %p699_p7 }
 0x331   : > { %p705_p12 = pnand %p704_p11, %p700_p8 }
 0x333   : > { %708 = shalt.err (!%p705_p12)
}
 0x334   : > { %634 = dma.vmem_to_hbm [thread:$0]  (%p812_p5), %s858_s8, 64, %s856_s11, %s506_s12  }
 0x335 PF: > { %p640_p13 = scmp.ge.s32.totalorder %s743_s18, 2  ;;  %s531_s5 = sand.u32 1, %s731_s15  }
 0x336   : > { %s532_s6 = scalar_lea.sflag [#allocation3], %s531_s5 }
 0x337   : > { %p637_p0 = pnand %p640_p13, %p816_p6 }
 0x339   : > { %p638_p1 = pneg %p637_p0 }
 0x33b   : > { %726 = dma.done.wait (%p638_p1), %s532_s6, 64  }
 0x33c   : > { %728 = vsyncadd (%p638_p1), %s532_s6, 4294967232  ;;  %p14_p2 = scmp.ge.s32.totalorder %s799_s21, 4   ;;  %s904_s15 = smov %s735_s16 }
 0x33d   : > { %s905_s16 = smov %s739_s17  ;;  %s906_s17 = smov %s810_s24 }
 0x33e   : > { %s907_s18 = smov %s799_s21  ;;  %16 = sbr.rel (!%p14_p2) target bundleno = 3 (0x3), region = 74 }
 0x343   :  { %537 = vsyncpa [#allocation3], 1 }
 0x344   :  { %539 = vsyncpa [#allocation3 + $0x1], 1 }

</bundles_post_ra>
